<compile_context>
chip_gen: v5e
topology: v5e:2x2
jax: 0.10.0
libtpu: 0.0.40
codegen_flags: <defaults>
</compile_context>

<pallas_src>
import functools

import jax
import jax.numpy as jnp
from jax.experimental import pallas as pl
from jax.experimental.pallas import tpu as pltpu

_LANE = 128
_NEG_BIG = -1e30  # acts as -inf after softmax; avoids NaN on fully-masked rows


def _attention_kernel(wt_ref, hsrc_ref, htgt_ref, bias_ref, out_ref, *,
                      compute_dtype):
    # wt_ref:   (Hp, Hp)           -- Linear weight, pre-transposed (in, out)
    # hsrc_ref: (BBLK, T_src, Hp)  -- encoder states for this batch block
    # htgt_ref: (BBLK, T_tgt, Hp)  -- decoder states for this batch block
    # bias_ref: (BBLK, 1, T_src)   -- additive mask bias (0 kept / -1e30 masked)
    # out_ref:  (BBLK, T_tgt, Hp)
    bb, t_tgt, hp = htgt_ref.shape

    wt = wt_ref[...].astype(compute_dtype)
    h_src = hsrc_ref[...].astype(compute_dtype)
    h_tgt = htgt_ref[...].astype(compute_dtype)

    # query = h_tgt @ W^T, flattened over (batch block, T_tgt): one MXU matmul.
    query = jnp.dot(h_tgt.reshape(bb * t_tgt, hp), wt,
                    preferred_element_type=jnp.float32)
    query = query.reshape(bb, t_tgt, hp).astype(compute_dtype)

    # scores = query @ h_src^T, batched over the batch block (f32 accumulation).
    scores = jnp.einsum("bqh,bkh->bqk", query, h_src,
                        preferred_element_type=jnp.float32)
    scores = scores + bias_ref[...]          # (BBLK, 1, T_src) broadcast over T_tgt

    # Softmax over T_src, kept in float32.
    row_max = jnp.max(scores, axis=-1, keepdims=True)
    p = jnp.exp(scores - row_max)
    denom = jnp.sum(p, axis=-1, keepdims=True)
    probs = p * pl.reciprocal(denom, approx=False)

    # context = probs @ h_src, batched (f32 accumulation).
    ctx = jnp.einsum("bqk,bkh->bqh", probs.astype(compute_dtype), h_src,
                     preferred_element_type=jnp.float32)
    out_ref[...] = ctx.astype(out_ref.dtype)


def attention_pallas(w, h_src, h_t_tgt, mask=None, *, bblk=16, matmul_dtype=None):
    """Luong 'general' attention.

    w:       [H, H]       nn.Linear(H, H, bias=False).weight (out, in)
    h_src:   [B, T_src, H]
    h_t_tgt: [B, T_tgt, H]
    mask:    [B, T_src] bool (True = masked) or None
    matmul_dtype: e.g. jnp.bfloat16 for the MXU bf16 path on v6e/v7x.
    """
    B, T_src, H = h_src.shape
    _, T_tgt, _ = h_t_tgt.shape
    out_dtype = h_t_tgt.dtype
    compute_dtype = matmul_dtype if matmul_dtype is not None else out_dtype

    # ---- lane-dense hidden dim (no-op if H already a multiple of 128) ----
    Hp = pl.cdiv(H, _LANE) * _LANE
    if Hp != H:
        h_src_p = jnp.pad(h_src, ((0, 0), (0, 0), (0, Hp - H)))
        h_tgt_p = jnp.pad(h_t_tgt, ((0, 0), (0, 0), (0, Hp - H)))
        w_p = jnp.pad(w, ((0, Hp - H), (0, Hp - H)))
    else:
        h_src_p, h_tgt_p, w_p = h_src, h_t_tgt, w
    w_t = jnp.transpose(w_p)  # (H_in_p, H_out_p): canonical (M,K)@(K,N) in-kernel

    # ---- additive mask bias ----
    if mask is None:
        bias = jnp.zeros((B, 1, T_src), dtype=jnp.float32)
    else:
        bias = mask.reshape(B, 1, T_src).astype(jnp.float32) * jnp.float32(_NEG_BIG)

    # ---- batch blocking ----
    BBLK = max(1, min(int(bblk), B))
    # Prefer >= 2 grid steps so the "parallel" batch axis spans both v7x TCs.
    if pl.cdiv(B, BBLK) < 2 and BBLK > 1:
        BBLK = max(1, BBLK // 2)

    # Cap BBLK so the double-buffered per-step footprint stays under ~24 MiB
    # (v7x: 32 MiB default scoped VMEM, 64 MiB physical).
    def _step_bytes(bb):
        blocks = bb * T_src * Hp + 2 * bb * T_tgt * Hp + bb * T_src + Hp * Hp
        return blocks * 4
    while BBLK > 1 and 2 * _step_bytes(BBLK) > 24 * 1024 * 1024:
        BBLK //= 2

    Bp = pl.cdiv(B, BBLK) * BBLK
    if Bp != B:
        pad_b = ((0, Bp - B), (0, 0), (0, 0))
        h_src_p = jnp.pad(h_src_p, pad_b)   # padded rows give ctx=0, no NaNs
        h_tgt_p = jnp.pad(h_tgt_p, pad_b)
        bias = jnp.pad(bias, pad_b)

    grid = (Bp // BBLK,)

    grid_spec = pltpu.PrefetchScalarGridSpec(
        num_scalar_prefetch=0,
        grid=grid,
        in_specs=[
            pl.BlockSpec((Hp, Hp), lambda b: (0, 0)),             # W^T (resident)
            pl.BlockSpec((BBLK, T_src, Hp), lambda b: (b, 0, 0)),
            pl.BlockSpec((BBLK, T_tgt, Hp), lambda b: (b, 0, 0)),
            pl.BlockSpec((BBLK, 1, T_src), lambda b: (b, 0, 0)),
        ],
        out_specs=pl.BlockSpec((BBLK, T_tgt, Hp), lambda b: (b, 0, 0)),
    )

    out = pl.pallas_call(
        functools.partial(_attention_kernel, compute_dtype=compute_dtype),
        out_shape=jax.ShapeDtypeStruct((Bp, T_tgt, Hp), out_dtype),
        grid_spec=grid_spec,
        compiler_params=pltpu.CompilerParams(
            dimension_semantics=("parallel",)),
    )(w_t, h_src_p, h_tgt_p, bias)

    return out[:B, :, :H]


def attention_ref(w, h_src, h_t_tgt, mask=None):
    """Plain-JAX reference matching the PyTorch forward (masked_fill(-inf))."""
    query = jnp.einsum("bth,oh->bto", h_t_tgt, w)
    weight = jnp.einsum("bto,bso->bts", query, h_src)
    if mask is not None:
        weight = jnp.where(mask[:, None, :], -jnp.inf, weight)
    weight = jax.nn.softmax(weight, axis=-1)
    return jnp.einsum("bts,bsh->bth", weight, h_src)


if __name__ == "__main__":
    B, T_src, T_tgt, H = 2, 8, 8, 32

    key = jax.random.PRNGKey(0)
    k_w, k_src, k_tgt = jax.random.split(key, 3)

    # Deterministic "parameters": nn.Linear(H, H, bias=False).weight -> [H, H]
    w = jax.random.normal(k_w, (H, H), dtype=jnp.float32) * (1.0 / jnp.sqrt(H))

    h_src = jax.random.normal(k_src, (B, T_src, H), dtype=jnp.float32)
    h_t_tgt = jax.random.normal(k_tgt, (B, T_tgt, H), dtype=jnp.float32)

    # Mask out the last two source positions of batch element 1 (True = masked).
    mask = jnp.zeros((B, T_src), dtype=bool).at[1, -2:].set(True)

    out = attention_pallas(w, h_src, h_t_tgt, mask)
    out = jax.block_until_ready(out)

    ref = attention_ref(w, h_src, h_t_tgt, mask)
    assert out.shape == (B, T_tgt, H)
    assert jnp.allclose(out, ref, atol=1e-5, rtol=1e-5), "mismatch vs reference"

    print("KERNEL_OK")
</pallas_src>

<mosaic_0001>
module attributes {stable_mosaic.version = 11 : i64} {
  func.func @_attention_kernel(%arg0: i32, %arg1: memref<128x128xf32, #tpu.memory_space<vmem>>, %arg2: memref<1x8x128xf32, #tpu.memory_space<vmem>>, %arg3: memref<1x8x128xf32, #tpu.memory_space<vmem>>, %arg4: memref<1x1x8xf32, #tpu.memory_space<vmem>>, %arg5: memref<1x8x128xf32, #tpu.memory_space<vmem>>) attributes {dimension_semantics = [#tpu.dimension_semantics<parallel>], iteration_bounds = array<i64: 2>, scalar_prefetch = 0 : i64, scratch_operands = 0 : i64, tpu.core_type = #tpu.core_type<tc>, window_params = [{pipeline_mode = #tpu.pipeline_mode<synchronous>, transform_indices = @transform_0, window_bounds = array<i64: 128, 128>}, {transform_indices = @transform_1, window_bounds = array<i64: 1, 8, 128>}, {transform_indices = @transform_2, window_bounds = array<i64: 1, 8, 128>}, {transform_indices = @transform_3, window_bounds = array<i64: 1, 1, 8>}, {transform_indices = @transform_4, window_bounds = array<i64: 1, 8, 128>}]} {
    %c0 = arith.constant 0 : index
    %c0_0 = arith.constant 0 : index
    %0 = vector.load %arg1[%c0, %c0_0] : memref<128x128xf32, #tpu.memory_space<vmem>>, vector<128x128xf32>
    %c0_1 = arith.constant 0 : index
    %c0_2 = arith.constant 0 : index
    %c0_3 = arith.constant 0 : index
    %1 = vector.load %arg2[%c0_1, %c0_2, %c0_3] : memref<1x8x128xf32, #tpu.memory_space<vmem>>, vector<1x8x128xf32>
    %c0_4 = arith.constant 0 : index
    %c0_5 = arith.constant 0 : index
    %c0_6 = arith.constant 0 : index
    %2 = vector.load %arg3[%c0_4, %c0_5, %c0_6] : memref<1x8x128xf32, #tpu.memory_space<vmem>>, vector<1x8x128xf32>
    %3 = vector.shape_cast %2 : vector<1x8x128xf32> to vector<8x128xf32>
    %cst = arith.constant dense<0.000000e+00> : vector<8x128xf32>
    %4 = tpu.matmul %3, %0, %cst {dimension_numbers = #tpu.dot_dimension_numbers<[1], [0], [0], [1], [0, 0, 1, 1], [], []>} : vector<8x128xf32>, vector<128x128xf32>, vector<8x128xf32> -> vector<8x128xf32>
    %5 = vector.shape_cast %4 : vector<8x128xf32> to vector<1x8x128xf32>
    "tpu.trace_start"() <{level = 10 : i32, message = "bqh,bkh->bqk"}> : () -> ()
    %cst_7 = arith.constant dense<0.000000e+00> : vector<1x8x8xf32>
    %6 = tpu.matmul %5, %1, %cst_7 {dimension_numbers = #tpu.dot_dimension_numbers<[2], [2], [1], [1], [0, 0, 0, 1, 1, 1], [0], [0]>} : vector<1x8x128xf32>, vector<1x8x128xf32>, vector<1x8x8xf32> -> vector<1x8x8xf32>
    "tpu.trace_stop"() : () -> ()
    %c0_8 = arith.constant 0 : index
    %c0_9 = arith.constant 0 : index
    %c0_10 = arith.constant 0 : index
    %7 = vector.load %arg4[%c0_8, %c0_9, %c0_10] : memref<1x1x8xf32, #tpu.memory_space<vmem>>, vector<1x1x8xf32>
    %8 = vector.broadcast %7 : vector<1x1x8xf32> to vector<1x8x8xf32>
    %9 = arith.addf %6, %8 : vector<1x8x8xf32>
    %cst_11 = arith.constant dense<0xFF800000> : vector<1x8xf32>
    %10 = vector.multi_reduction <maximumf>, %9, %cst_11 [2] : vector<1x8x8xf32> to vector<1x8xf32>
    %11 = vector.shape_cast %10 : vector<1x8xf32> to vector<1x8x1xf32>
    %12 = vector.broadcast %11 : vector<1x8x1xf32> to vector<1x8x8xf32>
    %13 = arith.subf %9, %12 : vector<1x8x8xf32>
    %14 = math.exp %13 : vector<1x8x8xf32>
    %cst_12 = arith.constant dense<0.000000e+00> : vector<1x8xf32>
    %15 = vector.multi_reduction <add>, %14, %cst_12 [2] : vector<1x8x8xf32> to vector<1x8xf32>
    %16 = vector.shape_cast %15 : vector<1x8xf32> to vector<1x8x1xf32>
    %17 = tpu.reciprocal %16 : vector<1x8x1xf32> -> vector<1x8x1xf32>
    %18 = vector.broadcast %17 : vector<1x8x1xf32> to vector<1x8x8xf32>
    %19 = arith.mulf %14, %18 : vector<1x8x8xf32>
    "tpu.trace_start"() <{level = 10 : i32, message = "bqk,bkh->bqh"}> : () -> ()
    %cst_13 = arith.constant dense<0.000000e+00> : vector<1x8x128xf32>
    %20 = tpu.matmul %19, %1, %cst_13 {dimension_numbers = #tpu.dot_dimension_numbers<[2], [1], [1], [2], [0, 0, 0, 1, 1, 2], [0], [0]>} : vector<1x8x8xf32>, vector<1x8x128xf32>, vector<1x8x128xf32> -> vector<1x8x128xf32>
    "tpu.trace_stop"() : () -> ()
    %c0_14 = arith.constant 0 : index
    %c0_15 = arith.constant 0 : index
    %c0_16 = arith.constant 0 : index
    %21 = vector.load %arg5[%c0_14, %c0_15, %c0_16] : memref<1x8x128xf32, #tpu.memory_space<vmem>>, vector<1x8x128xf32>
    tpu.vector_store %arg5[%c0_14, %c0_15, %c0_16], %20 {strides = array<i32>} : memref<1x8x128xf32, #tpu.memory_space<vmem>>, vector<1x8x128xf32>,
    return
  }
  func.func @transform_0(%arg0: i32) -> (i32, i32) {
    %c0_i32 = arith.constant 0 : i32
    %c0_i32_0 = arith.constant 0 : i32
    %c0_i32_1 = arith.constant 0 : i32
    return %c0_i32, %c0_i32_0 : i32, i32
  }
  func.func @transform_1(%arg0: i32) -> (i32, i32, i32) {
    %c0_i32 = arith.constant 0 : i32
    %c0_i32_0 = arith.constant 0 : i32
    %c0_i32_1 = arith.constant 0 : i32
    return %arg0, %c0_i32, %c0_i32_0 : i32, i32, i32
  }
  func.func @transform_2(%arg0: i32) -> (i32, i32, i32) {
    %c0_i32 = arith.constant 0 : i32
    %c0_i32_0 = arith.constant 0 : i32
    %c0_i32_1 = arith.constant 0 : i32
    return %arg0, %c0_i32, %c0_i32_0 : i32, i32, i32
  }
  func.func @transform_3(%arg0: i32) -> (i32, i32, i32) {
    %c0_i32 = arith.constant 0 : i32
    %c0_i32_0 = arith.constant 0 : i32
    %c0_i32_1 = arith.constant 0 : i32
    return %arg0, %c0_i32, %c0_i32_0 : i32, i32, i32
  }
  func.func @transform_4(%arg0: i32) -> (i32, i32, i32) {
    %c0_i32 = arith.constant 0 : i32
    %c0_i32_0 = arith.constant 0 : i32
    %c0_i32_1 = arith.constant 0 : i32
    return %arg0, %c0_i32, %c0_i32_0 : i32, i32, i32
  }
}

</mosaic_0001>

<bundles_post_ra>
// kernel: tpu_custom_call.1
= control target key start
LH: loop header
LB: loop body
LE: loop exit
PB: predicated region body
PF: predicated region fallthrough
CT: control target
= control target key end

     0   :  { %s986_s0 = inlined_call_operand.hbm [shape: f32[128,128], index: 0, kind: input, shape index: {}]   ;;  %s987_s1 = inlined_call_operand.hbm [shape: f32[2,8,128], index: 1, kind: input, shape index: {}]   ;;  %s988_s2 = inlined_call_operand.hbm [shape: f32[2,8,128], index: 2, kind: input, shape index: {}]   ;;  %s989_s3 = inlined_call_operand.vmem [shape: f32[2,1,8], index: 3, kind: input, shape index: {}]   ;;  %s990_s4 = inlined_call_operand.hbm [shape: f32[2,8,128], index: 4, kind: output, shape index: {}]  }
   0x1   :  { %992 = sst [smem:[#allocation12_spill]] %s986_s0 }
   0x2   :  { %993 = sst [smem:[#allocation13_spill]] %s987_s1 }
   0x3   :  { %9 = vsyncpa [#allocation3], 0 }
   0x4   :  { %10 = vsyncpa [#allocation6], 0 }
   0x5   :  { %12 = vsyncpa [#allocation6 + $0x1], 0 }
   0x6   :  { %13 = vsyncpa [#allocation4], 0 }
   0x7   :  { %15 = vsyncpa [#allocation4 + $0x1], 0  ;;  %s797_s15 = smov 0   ;;  %s799_s16 = smov 0  }
   0x8   :  { %s801_s17 = smov 0   ;;  %s803_s18 = smov 0  }
   0x9 LB: > { %s818_s19 = sadd.s32 4294967295, %s767_s18   ;;  %s520_s20 = sadd.s32 4294967294, %s767_s18   ;;  %s767_s18 = sphi %s803_s18, %s1008_s18   ;;  %s763_s17 = sphi %s801_s17, %s1007_s17   ;;  %s759_s16 = sphi %s799_s16, %s1006_s16   ;;  %s755_s15 = sphi %s797_s15, %s1005_s15  }
   0xa   : > { %s822_s21 = sadd.s32 1, %s767_s18   ;;  %s49_s22 = sadd.s32 1, %s763_s17 }
   0xb   : > { %s46_s23 = ssub.s32 %s767_s18, %s822_s21  ;;  %p56_p0 = scmp.ne.s32.totalorder %s763_s17, %s759_s16 }
   0xc   : > { %p47_p1 = scmp.eq.s32.totalorder %s46_s23, 0  ;;  %p57_p2 = scmp.eq.s32.totalorder %s767_s18, 0 }
   0xd   : > { %p62_p3 = scmp.ne.s32.totalorder %s759_s16, %s755_s15  ;;  %p138_p4 = scmp.eq.s32.totalorder %s818_s19, 1 }
   0xe   : > { %s834_s24 = scalar_select %p47_p1, %s763_s17, %s49_s22  }
   0xf   : > { %p836_p5 = por %p138_p4, %p56_p0  ;;  %p144_p6 = scmp.eq.s32.totalorder %s520_s20, 1 }
  0x10   : > { %p840_p7 = por %p57_p2, %p56_p0  ;;  %p564_p10 = scmp.lt.s32.totalorder %s767_s18, 2 }
  0x11   : > { %p848_p9 = por %p144_p6, %p62_p3  ;;  %s178_s28 = sand.u32 1, %s767_s18  }
  0x12   : > { %s180_s29 = sand.u32 1, %s763_s17   ;;  %s525_s5 = sshll.u32 %s767_s18, 3 }
  0x13   : > { %s855_s30 = sshll.u32 %s180_s29, 3  ;;  %s997_s1 = sld [smem:[#allocation13_spill]] }
  0x14   : > { %s182_s10 = scalar_lea.vmem [#allocation5], %s855_s30  ;;  %p864_p11 = pnand %p564_p10, %p840_p7 }
  0x15   : > { %s190_s11 = sshll.u32 %s182_s10, 4  ;;  %p991_p12 = scmp.eq.s32.totalorder %s818_s19, 0  ;;  %s191_s11 = int_to_ptr.vmem [resolvable:$true] %s190_s11 }
  0x16   : > { %p521_p13 = scmp.ge.s32.totalorder %s767_s18, 1  ;;  %s870_s13 = scalar_lea.sflag [#allocation6], %s178_s28 }
  0x17   : > { %p611_p1 = pneg %p864_p11 }
  0x19   : > { %s186_s8 = scalar_lea.hbm %s997_s1, %s525_s5  ;;  %s614_s26 = scalar_lea.hbm %s997_s1, 16 }
  0x1a   : > { %s188_s9 = sshll.u32 %s186_s8, 4  ;;  %s189_s9 = int_to_ptr.hbm [resolvable:$true] %s188_s9 }
  0x1b   : > { %s607_s14 = sshra.s32 %s189_s9, 4  ;;  %s608_s14 = int_to_ptr.hbm [resolvable:$true] %s607_s14 }
  0x1c   : > { %s609_s20 = scalar_lea.hbm %s608_s14, 8  ;;  %p615_p6 = scmp.lt.s32.totalorder %s608_s14, %s997_s1 }
  0x1d   : > { %p610_p0 = scmp.ne.s32.totalorder %s608_s14, %s609_s20  ;;  %p616_p7 = scmp.lt.s32.totalorder %s614_s26, %s609_s20 }
  0x1f   : > { %p612_p2 = pnand %p611_p1, %p610_p0  ;;  %p617_p10 = por %p616_p7, %p615_p6 }
  0x21   : > { %p613_p4 = pneg %p612_p2 }
  0x23   : > { %p618_p8 = pnand %p617_p10, %p613_p4 }
  0x25   : > { %621 = shalt.err (!%p618_p8)
}
  0x26   : > { %555 = dma.hbm_to_vmem [thread:$0]  (!%p864_p11), %s189_s9, 128, %s191_s11, %s870_s13  }
  0x27   : > { %p891_p0 = por %p991_p12, %p62_p3  ;;  %p151_p2 = scmp.lt.s32.totalorder %s767_s18, 3 }
  0x28   : > { %s1000_s0 = sld [smem:[#allocation12_spill]]  ;;  %s205_s22 = scalar_lea.hbm %s988_s2, %s525_s5 }
  0x29   : > { %p904_p8 = pnand %p521_p13, %p151_p2  ;;  %s769_s9 = smov [#allocation2]  }
  0x2a   : > { %s164_s11 = sshll.u32 %s769_s9, 4  ;;  %s207_s26 = sshll.u32 %s205_s22, 4  ;;  %s165_s11 = int_to_ptr.vmem [resolvable:$true] %s164_s11  ;;  %s208_s26 = int_to_ptr.hbm [resolvable:$true] %s207_s26 }
  0x2b   : > { %p548_p3 = pneg %p904_p8  ;;  %s201_s29 = scalar_lea.vmem [#allocation7], %s855_s30 }
  0x2c   : > { %s209_s6 = sshll.u32 %s201_s29, 4  ;;  %s770_s5 = smov 128   ;;  %s210_s6 = int_to_ptr.vmem [resolvable:$true] %s209_s6 }
  0x2d   : > { %p549_p4 = pnand %p548_p3, %p991_p12  ;;  %s771_s7 = smov 8  }
  0x2e   : > { %s162_s10 = sshll.u32 %s1000_s0, 4  ;;  %s667_s8 = sshra.s32 %s208_s26, 4  ;;  %s163_s10 = int_to_ptr.hbm [resolvable:$true] %s162_s10  ;;  %s668_s8 = int_to_ptr.hbm [resolvable:$true] %s667_s8 }
  0x2f   : > { %551 = dma.hbm_to_vmem [thread:$0]  (!%p549_p4), %s163_s10, 2048, %s165_s11, [#allocation3], %s770_s5, %s770_s5, %s771_s7  }
  0x30   : > { %s669_s14 = scalar_lea.hbm %s668_s8, 8  ;;  %s674_s22 = scalar_lea.hbm %s988_s2, 16 }
  0x31   : > { %p670_p13 = scmp.ne.s32.totalorder %s668_s8, %s669_s14  ;;  %p675_p10 = scmp.lt.s32.totalorder %s668_s8, %s988_s2 }
  0x32   : > { %p676_p2 = scmp.lt.s32.totalorder %s674_s22, %s669_s14 }
  0x33   : > { %p672_p6 = pnand %p670_p13, %p611_p1 }
  0x34   : > { %p677_p3 = por %p676_p2, %p675_p10 }
  0x35   : > { %p673_p7 = pneg %p672_p6 }
  0x37   : > { %p678_p12 = pnand %p677_p3, %p673_p7 }
  0x39   : > { %681 = shalt.err (!%p678_p12)
}
  0x3a   : > { %558 = dma.hbm_to_vmem [thread:$0]  (!%p864_p11), %s208_s26, 128, %s210_s6, %s870_s13  }
  0x3b   : > { %224 = sbr.rel (%p904_p8) target bundleno = 754 (0x2f2), region = 36  ;;  %p1002_p1 = scmp.eq.s32.totalorder (!%p904_p8), %s818_s19, 0 }
  0x40   : > { %742 = dma.done.wait (%p1002_p1), [#allocation3], 2048   ;;  %p1003_p4 = pmov %p1002_p1 }
  0x41   : > { %s231_s0 = sand.u32 1, %s818_s19   ;;  %s233_s1 = sand.u32 1, %s759_s16  }
  0x42   : > { %744 = vsyncadd (%p1003_p4), [#allocation3], 4294965248  ;;  %s935_s30 = sshll.u32 %s233_s1, 3  ;;  %s232_s12 = scalar_lea.sflag [#allocation6], %s231_s0 }
  0x43   : > { %s235_s13 = scalar_lea.vmem [#allocation5], %s935_s30 }
  0x44   : > { %746 = dma.done.wait (%p891_p0), %s232_s12, 256  }
  0x45   : > { %748 = vsyncadd (%p891_p0), %s232_s12, 4294967040  ;;  %v297_v0 = vld [vmem:[#allocation2 + $0x78] sm:$0xff]  ;;  %v296_v1 = vld [vmem:[#allocation2 + $0x70] sm:$0xff]  ;;  %s245_s28 = scalar_lea.vmem [#allocation7], %s935_s30  ;;  %p279_p11 = scmp.lt.s32.totalorder %s818_s19, 1  ;;  %vm344_vm0 = vcmask 64512  }
  0x46   : > { %300 = vmatpush.msra.mxu0 %v297_v0  ;;  %v295_v2 = vld [vmem:[#allocation2 + $0x68] sm:$0xff]  ;;  %v294_v3 = vld [vmem:[#allocation2 + $0x60] sm:$0xff]  ;;  %v293_v5 = vld [vmem:[#allocation2 + $0x58] sm:$0xff]  ;;  %s535_s29 = sshll.u32 %s818_s19, 3  ;;  %s278_s8 = scalar_lea.vmem [#allocation8], %s935_s30 }
  0x47   : > { %v298_v4 = vld [vmem:[%s235_s13] sm:$0xff]  ;;  %v292_v6 = vld [vmem:[#allocation2 + $0x50] sm:$0xff]  ;;  %v289_v9 = vld [vmem:[#allocation2 + $0x38] sm:$0xff]  ;;  %s280_s10 = scalar_select %p279_p11, %s818_s19, 1 }
  0x48   : > { %301 = vmatpush.msra.mxu0 %v296_v1  ;;  %339 = vmatpush.xpose.msra.mxu1 %v298_v4  ;;  %v291_v7 = vld [vmem:[#allocation2 + $0x48] sm:$0xff]  ;;  %v290_v8 = vld [vmem:[#allocation2 + $0x40] sm:$0xff]  ;;  %v288_v10 = vld [vmem:[#allocation2 + $0x30] sm:$0xff]  ;;  %s404_s7 = scalar_lea.hbm %s990_s4, %s535_s29  ;;  %s406_s14 = sshll.u32 %s278_s8, 4  ;;  %s407_s14 = int_to_ptr.vmem [resolvable:$true] %s406_s14 }
  0x49   : > { %387 = vmatpush.msra.mxu2 %v298_v4  ;;  %v287_v11 = vld [vmem:[#allocation2 + $0x28] sm:$0xff]  ;;  %v286_v12 = vld [vmem:[#allocation2 + $0x20] sm:$0xff]  ;;  %v285_v13 = vld [vmem:[#allocation2 + $0x18] sm:$0xff]  ;;  %s281_s26 = scalar_lea.vmem %s989_s3, %s280_s10  ;;  %s408_s20 = sshll.u32 %s404_s7, 4  ;;  %s409_s20 = int_to_ptr.hbm [resolvable:$true] %s408_s20 }
  0x4a   : > { %302 = vmatpush.msra.mxu0 %v295_v2  ;;  %v284_v14 = vld [vmem:[#allocation2 + $0x10] sm:$0xff]  ;;  %v283_v15 = vld [vmem:[#allocation2 + $0x8] sm:$0xff]  ;;  %v282_v16 = vld [vmem:[#allocation2] sm:$0xff]  ;;  %s394_s9 = scalar_lea.sflag [#allocation4], %s233_s1  ;;  %s711_s22 = sshra.s32 %s409_s20, 4  ;;  %s712_s22 = int_to_ptr.hbm [resolvable:$true] %s711_s22 }
  0x4b   : > { %v299_v17 = vld [vmem:[%s245_s28] sm:$0xff]  ;;  %v602_v19 = vld [vmem:[%s281_s26] ss:$0 sm:$0xff]  ;;  %s713_s0 = scalar_lea.hbm %s712_s22, 8  ;;  %s717_s13 = scalar_lea.hbm %s990_s4, 16 }
  0x4c   : > { %303 = vmatpush.msra.mxu0 %v294_v3  ;;  %p714_p12 = scmp.ne.s32.totalorder %s712_s22, %s713_s0  ;;  %p718_p13 = scmp.lt.s32.totalorder %s712_s22, %s990_s4 }
  0x4d   : > { %p719_p6 = scmp.lt.s32.totalorder %s717_s13, %s713_s0 }
  0x4e   : > { %304 = vmatpush.msra.mxu0 %v293_v5  ;;  %p715_p0 = pnand %p714_p12, %p836_p5 }
  0x4f   : > { %p720_p7 = por %p719_p6, %p718_p13 }
  0x50   : > { %305 = vmatpush.msra.mxu0 %v292_v6  ;;  %p716_p8 = pneg %p715_p0 }
  0x52   : > { %306 = vmatpush.msra.mxu0 %v291_v7  ;;  %p721_p10 = pnand %p720_p7, %p716_p8 }
  0x54   : > { %307 = vmatpush.msra.mxu0 %v290_v8 }
  0x56   : > { %308 = vmatpush.msra.mxu0 %v289_v9 }
  0x58   : > { %309 = vmatpush.msra.mxu0 %v288_v10 }
  0x5a   : > { %310 = vmatpush.msra.mxu0 %v287_v11 }
  0x5c   : > { %311 = vmatpush.msra.mxu0 %v286_v12 }
  0x5e   : > { %312 = vmatpush.msra.mxu0 %v285_v13 }
  0x60   : > { %313 = vmatpush.msra.mxu0 %v284_v14 }
  0x62   : > { %314 = vmatpush.msra.mxu0 %v283_v15 }
  0x64   : > { %315 = vmatpush.msra.mxu0 %v282_v16 }
  0x65   : > { %316 = vmatmul.f32.vlgmr.msra.gmra.mxu0 %v299_v17 }
  0xe2   : > { %v317_v18 = vpop.f32.mrf.mxu0 }
  0xe3   : > { %340 = vmatmul.f32.vlgmr.msra.gmra.mxu1 %v317_v18 }
 0x160   : > { %v341_v20 = vpop.f32.mrf.mxu1 }
 0x161   : > { %v342_v21 = vadd.f32 %v602_v19, %v341_v20 }
 0x163   : > { %v345_v22 = vsel %vm344_vm0, %v342_v21, -inf }
 0x164   : > { %346 = vmax.xlane.f32.xlu0 %v345_v22 }
 0x1d7   : > { %v347_v23 = vpop.xlane.xlu0 %346 }
 0x1d8   : > { %v348_v24 = vsub.f32 %v342_v21, %v347_v23 }
 0x1da   : > { %v349_v25 = vmul.f32 1.442695, %v348_v24 }
 0x1dc   : > { %603 = vpow2.f32 %v349_v25 }
 0x1e2   : > { %v604_v26 = vpop.eup %603 }
 0x1e3   : > { %v351_v27 = vsel %vm344_vm0, %v604_v26, 0.0 }
 0x1e4   : > { %352 = vadd.xlane.f32.xlu0 %v351_v27 }
 0x257   : > { %v353_v28 = vpop.xlane.xlu0 %352 }
 0x258   : > { %605 = vrcp.f32 %v353_v28  ;;  %v365_v32 = vand.u32 2147483648, %v353_v28  ;;  %v363_v34 = vand.u32 2147483647, %v353_v28  ;;  %vm359_vm2 = vweird.f32 %v353_v28 }
 0x25a   : > { %v366_v36 = vor.u32 1.1754944e-38, %v365_v32  ;;  %vm364_vm4 = vcmp.eq.f32.partialorder %v363_v34, 8.507059e+37 }
 0x25e   : > { %v606_v29 = vpop.eup %605 }
 0x25f   : > { %v355_v30 = vmul.f32 %v606_v29, %v353_v28  ;;  %vm360_vm1 = vweird.f32 %v606_v29 }
 0x260   : > { %vm361_vm3 = vmor %vm359_vm2, %vm360_vm1 }
 0x261   : > { %v356_v31 = vsub.f32 1.0, %v355_v30 }
 0x263   : > { %v357_v33 = vmul.f32 %v606_v29, %v356_v31 }
 0x265   : > { %v358_v35 = vadd.f32 %v606_v29, %v357_v33 }
 0x267   : > { %v362_v37 = vsel %vm361_vm3, %v606_v29, %v358_v35 }
 0x268   : > { %v367_v38 = vsel %vm364_vm4, %v366_v36, %v362_v37 }
 0x269   : > { %v368_v39 = vmul.f32 %v604_v26, %v367_v38 }
 0x26b   : > { %533 = vmatmul.msk.f32.vlgmr.msra.gmra.mxu2 %vm344_vm0, %v368_v39 }
 0x2ee   : > { %v389_v40 = vpop.f32.mrf.mxu2 }
 0x2ef   : > { %392 = vst [vmem:[%s278_s8] sm:$0xff] %v389_v40 }
 0x2f0   : > { %724 = shalt.err (!%p721_p10)
}
 0x2f1   : > { %546 = dma.vmem_to_hbm [thread:$0]  (%p836_p5), %s407_s14, 128, %s409_s20, %s394_s9  }
 0x2f2 PF: > { %s420_s1 = sand.u32 1, %s755_s15   ;;  %p1004_p2 = scmp.ge.s32.totalorder %s767_s18, 2 }
 0x2f3   : > { %s421_s10 = scalar_lea.sflag [#allocation4], %s420_s1 }
 0x2f4   : > { %p560_p3 = pnand %p1004_p2, %p848_p9 }
 0x2f6   : > { %p561_p1 = pneg %p560_p3 }
 0x2f8   : > { %750 = dma.done.wait (%p561_p1), %s421_s10, 128  }
 0x2f9   : > { %752 = vsyncadd (%p561_p1), %s421_s10, 4294967168  ;;  %p18_p4 = scmp.ge.s32.totalorder %s822_s21, 4   ;;  %s1005_s15 = smov %s759_s16 }
 0x2fa   : > { %s1006_s16 = smov %s763_s17  ;;  %s1007_s17 = smov %s834_s24 }
 0x2fb   : > { %s1008_s18 = smov %s822_s21  ;;  %20 = sbr.rel (!%p18_p4) target bundleno = 9 (0x9), region = 100 }
 0x300   :  { %427 = vsyncpa [#allocation3], 1 }
 0x301   :  { %429 = vsyncpa [#allocation3 + $0x1], 1 }
 0x302   :  { %430 = vsyncpa [#allocation6], 1 }
 0x303   :  { %432 = vsyncpa [#allocation6 + $0x1], 1 }
 0x304   :  { %433 = vsyncpa [#allocation4], 1 }
 0x305   :  { %435 = vsyncpa [#allocation4 + $0x1], 1 }

</bundles_post_ra>
